<compile_context>
chip_gen: v6e
topology: v6e:2x2x1
jax: 0.10.0
libtpu: 0.0.40
codegen_flags: <defaults>
</compile_context>

<pallas_src>
import jax
import jax.numpy as jnp
from jax.experimental import pallas as pl
from jax.experimental.pallas import tpu as pltpu


LANE = 128
# 1024 lanes sits at the measured HBM-roofline knee (512 -> 85%, 1024 -> 86%)
# while the double-buffered footprint stays tiny (C * 1024 * 4B per buffer)
# on all of v5e / v6e / v7x scoped-VMEM budgets.
DEFAULT_TILE_N = 1024
VMEM_LIMIT_BYTES = 32 * 1024 * 1024


# ----------------------------------------------------------------------------
# Pallas kernels
# ----------------------------------------------------------------------------
def conv1x1_kernel(w_ref, b_ref, x_ref, o_ref):
    """Hooked feature layer: 1x1 conv (== matmul over channels) + bias + ReLU.

    w: (C, Cin)   b: (C, 1)   x: (Cin, TILE_N)   o: (C, TILE_N)
    (For large real C/Cin, cast operands to bf16 and pad C/Cin to MXU-native
    multiples; at the toy C=8/Cin=4 the matmul hides fully under the DMA.)
    """
    acts = jnp.dot(w_ref[...], x_ref[...], preferred_element_type=jnp.float32)
    o_ref[...] = jnp.maximum(acts + b_ref[...], 0.0)


def grad_channel_sum_kernel(g_ref, o_ref):
    """Per-channel gradient sum, accumulated across the lane-tile grid.

    g: (C, TILE_N)    o: (C, 1) accumulator, resident across the grid axis.
    """
    @pl.when(pl.program_id(0) == 0)
    def _():
        o_ref[...] = jnp.zeros_like(o_ref)

    o_ref[...] += jnp.sum(g_ref[...], axis=1, keepdims=True)


def cam_weighted_mean_kernel(s_ref, a_ref, heat_ref, hmax_ref):
    """Channel-weighted mean + ReLU for one lane tile, with the global-max
    reduction fused in as a resident (1, 1) accumulator.

    s: (C, 1) per-channel weights, pre-scaled by 1/(N*C) so both the gradient
       mean (1/N) and the channel mean (1/C) fold into one multiply.
    a: (C, TILE_N) activations
    heat: (1, TILE_N) unnormalized heat (lane-dense store)
    hmax: (1, 1) running max across all tiles (valid because relu(heat) >= 0,
          so zero-initialization and zero lane padding cannot inflate it).
    With tiny C (=8) the broadcast-MAC + sublane reduce on the VPU/XLU beats a
    (1,C)x(C,TILE_N) MXU pass; the weighted intermediate never leaves vregs.
    """
    @pl.when(pl.program_id(0) == 0)
    def _():
        hmax_ref[...] = jnp.zeros_like(hmax_ref)

    heat = jnp.maximum(
        jnp.sum(a_ref[...] * s_ref[...], axis=0, keepdims=True), 0.0)
    heat_ref[...] = heat
    hmax_ref[...] = jnp.maximum(hmax_ref[...],
                                jnp.max(heat, axis=1, keepdims=True))


# ----------------------------------------------------------------------------
# Tiling / padding helpers
# ----------------------------------------------------------------------------
def _round_up(x, m):
    return ((x + m - 1) // m) * m


def _tile_and_pad(n, target=DEFAULT_TILE_N):
    """Lane tile (multiple of 128) and the padded N it divides evenly."""
    n_aligned = _round_up(n, LANE)
    tile = min(target, n_aligned)
    n_pad = _round_up(n_aligned, tile)
    return tile, n_pad


def _pad_lanes(x, n_pad):
    n = x.shape[-1]
    if n == n_pad:
        return x
    return jnp.pad(x, ((0, 0), (0, n_pad - n)))


# ----------------------------------------------------------------------------
# Pallas wrappers
# ----------------------------------------------------------------------------
def conv1x1(w, b, x_flat, *, tile_n=DEFAULT_TILE_N):
    """ReLU(1x1 conv) over a (Cin, N) channel-major slab, tiled over N."""
    C, Cin = w.shape
    _, N = x_flat.shape
    tile_n, n_pad = _tile_and_pad(N, tile_n)
    x_p = _pad_lanes(x_flat, n_pad)
    grid = (n_pad // tile_n,)

    out = pl.pallas_call(
        conv1x1_kernel,
        out_shape=jax.ShapeDtypeStruct((C, n_pad), jnp.float32),
        grid=grid,
        in_specs=[
            pl.BlockSpec((C, Cin), lambda j: (0, 0)),      # weights resident
            pl.BlockSpec((C, 1), lambda j: (0, 0)),        # bias resident
            pl.BlockSpec((Cin, tile_n), lambda j: (0, j)),
        ],
        out_specs=pl.BlockSpec((C, tile_n), lambda j: (0, j)),
        compiler_params=pltpu.CompilerParams(
            dimension_semantics=("parallel",),             # megacore on v7x
            vmem_limit_bytes=VMEM_LIMIT_BYTES),
        cost_estimate=pl.CostEstimate(
            flops=2 * C * Cin * n_pad,
            transcendentals=0,
            bytes_accessed=4 * (Cin * n_pad + C * n_pad + C * Cin + C)),
    )(w, b, x_p)
    return out[:, :N]


def grad_cam(acts_flat, grads_flat, *, tile_n=DEFAULT_TILE_N):
    """Grad-CAM reduction matching _compute_cam:
    scores = mean(grad), heat = relu(mean_c(act * score)), heat /= max(heat).
    Global reductions live in tiny resident VMEM accumulators; only the final
    scalar divide stays in plain JAX.
    """
    C, N = acts_flat.shape
    tile_n, n_pad = _tile_and_pad(N, tile_n)
    acts_p = _pad_lanes(acts_flat, n_pad)
    grads_p = _pad_lanes(grads_flat, n_pad)
    grid = (n_pad // tile_n,)

    # Pass 1: per-channel gradient sum (zero lane padding leaves it intact).
    ch_sum = pl.pallas_call(
        grad_channel_sum_kernel,
        out_shape=jax.ShapeDtypeStruct((C, 1), jnp.float32),
        grid=grid,
        in_specs=[pl.BlockSpec((C, tile_n), lambda j: (0, j))],
        out_specs=pl.BlockSpec((C, 1), lambda j: (0, 0)),  # accumulator
        compiler_params=pltpu.CompilerParams(
            dimension_semantics=("arbitrary",),            # reduction axis
            vmem_limit_bytes=VMEM_LIMIT_BYTES),
        cost_estimate=pl.CostEstimate(
            flops=C * n_pad,
            transcendentals=0,
            bytes_accessed=4 * (C * n_pad + C)),
    )(grads_p)

    # scores = mean(grad, dims=[0,2,3]) = ch_sum / N; also fold the 1/C of the
    # channel mean so the tile kernel does a single fused multiply.
    weights = ch_sum * (1.0 / (N * C))                     # (C, 1)

    # Pass 2: heat = relu(sum_c weights[c] * acts[c]) per lane tile, with the
    # global max fused in as a (1, 1) accumulator so the heatmap is never
    # re-read from HBM just to compute jnp.max.
    heat_p, hmax = pl.pallas_call(
        cam_weighted_mean_kernel,
        out_shape=(jax.ShapeDtypeStruct((1, n_pad), jnp.float32),
                   jax.ShapeDtypeStruct((1, 1), jnp.float32)),
        grid=grid,
        in_specs=[
            pl.BlockSpec((C, 1), lambda j: (0, 0)),        # weights resident
            pl.BlockSpec((C, tile_n), lambda j: (0, j)),
        ],
        out_specs=[
            pl.BlockSpec((1, tile_n), lambda j: (0, j)),   # lane-dense heat
            pl.BlockSpec((1, 1), lambda j: (0, 0)),        # running max acc
        ],
        compiler_params=pltpu.CompilerParams(
            dimension_semantics=("arbitrary",),            # max accumulator
            vmem_limit_bytes=VMEM_LIMIT_BYTES),
        cost_estimate=pl.CostEstimate(
            flops=3 * C * n_pad,
            transcendentals=0,
            bytes_accessed=4 * (C * n_pad + n_pad + C + 1)),
    )(weights, acts_p)

    heat = heat_p[:, :N]
    # heatmap / max(heatmap): single scalar divide kept in plain JAX; the
    # zero-padded lanes contribute only zeros to hmax, so it equals the true
    # max of the valid region.  Guard the all-zero case (PyTorch would
    # produce NaNs there).
    hmax_s = hmax[0, 0]
    return jnp.where(hmax_s > 0.0, heat / hmax_s, heat)


# ----------------------------------------------------------------------------
# Synthetic "VQA model" pieces (glue, plain JAX)
# ----------------------------------------------------------------------------
def nchw_to_flat(x):
    # (B, C, H, W) -> (C, B*H*W)
    B, C, H, W = x.shape
    return jnp.transpose(x, (1, 0, 2, 3)).reshape(C, B * H * W)


def flat_to_bhw(x_flat, B, H, W):
    # (1, B*H*W) -> (B, H, W)
    return x_flat.reshape(B, H, W)


def classifier_logits(acts_flat, wc, bc, B, HW):
    """Head after the hooked layer: global-avg-pool + linear -> answer logits."""
    C = acts_flat.shape[0]
    pooled = jnp.mean(acts_flat.reshape(C, B, HW), axis=2).T  # (B, C)
    return pooled @ wc.T + bc                                 # (B, A)


def grad_cam_for_vqa(x_nchw, params):
    """Full forward analogue of GradCamForVQA._compute_cam (y=None).

    Returns the normalized Grad-CAM heatmap (H, W) for batch size 1.
    """
    B, Cin, H, W = x_nchw.shape
    HW = H * W
    x_flat = nchw_to_flat(x_nchw)                             # (Cin, B*H*W)

    # Hooked layer (Pallas 1x1-conv kernel) -> activation_maps
    acts_flat = conv1x1(params["wf"], params["bf"], x_flat)   # (C, B*H*W)

    # Model head + answer selection (softmax / max over dim=1)
    logits = classifier_logits(acts_flat, params["wc"], params["bc"], B, HW)
    probs = jax.nn.softmax(logits, axis=1)
    answer_idx = jnp.argmax(probs, axis=1)                    # (B,); B == 1

    # out[:, answer_idx].backward() -> gradients w.r.t. the hooked activations.
    # TODO(synk): register_hook/.backward() autograd has no Pallas equivalent;
    # the gradient itself is obtained with jax.grad (plain JAX).
    def scalar_out(a_flat):
        lg = classifier_logits(a_flat, params["wc"], params["bc"], B, HW)
        return lg[0, answer_idx[0]]

    grads_flat = jax.grad(scalar_out)(acts_flat)              # (C, B*H*W)

    # Grad-CAM reduction (Pallas kernels): scores, weighted mean, relu, /max
    heat_flat = grad_cam(acts_flat, grads_flat)               # (1, B*H*W)
    heat = flat_to_bhw(heat_flat, B, H, W)
    return jnp.squeeze(heat)                                  # (H, W) for B=1


# ----------------------------------------------------------------------------
if __name__ == "__main__":
    key = jax.random.PRNGKey(0)
    k_x, k_wf, k_bf, k_wc, k_bc = jax.random.split(key, 5)

    # Small, module-consistent shapes.  batch=1 (Grad-CAM backprop needs a
    # scalar out[:, idx]; the module asserts y.shape == [1]), Cin=4 input
    # channels, C=8 feature channels, 64x64 spatial (N=4096 -> four 1024-lane
    # tiles, exercising the pipelined grid and both accumulators), 16 answers.
    B, Cin, C, H, W, A = 1, 4, 8, 64, 64, 16

    x = jax.random.normal(k_x, (B, Cin, H, W), dtype=jnp.float32)

    params = {
        "wf": jax.random.normal(k_wf, (C, Cin), dtype=jnp.float32) * 0.5,
        "bf": jax.random.normal(k_bf, (C, 1), dtype=jnp.float32) * 0.1,
        "wc": jax.random.normal(k_wc, (A, C), dtype=jnp.float32) * 0.5,
        "bc": jax.random.normal(k_bc, (A,), dtype=jnp.float32) * 0.1,
    }

    heatmap = grad_cam_for_vqa(x, params)
    jax.block_until_ready(heatmap)
    assert heatmap.shape == (H, W)
    assert bool(jnp.all(jnp.isfinite(heatmap)))
    # Normalized heatmap must lie in [0, 1] with max exactly 1 (non-degenerate).
    assert bool(jnp.min(heatmap) >= 0.0)
    assert bool(jnp.abs(jnp.max(heatmap) - 1.0) < 1e-5)
    print("KERNEL_OK")
</pallas_src>

<mosaic_0001>
module attributes {stable_mosaic.version = 11 : i64} {
  func.func @conv1x1_kernel(%arg0: i32, %arg1: memref<8x4xf32, #tpu.memory_space<vmem>>, %arg2: memref<8x1xf32, #tpu.memory_space<vmem>>, %arg3: memref<4x1024xf32, #tpu.memory_space<vmem>>, %arg4: memref<8x1024xf32, #tpu.memory_space<vmem>>) attributes {dimension_semantics = [#tpu.dimension_semantics<parallel>], iteration_bounds = array<i64: 4>, scalar_prefetch = 0 : i64, scratch_operands = 0 : i64, tpu.core_type = #tpu.core_type<tc>, window_params = [{pipeline_mode = #tpu.pipeline_mode<synchronous>, transform_indices = @transform_0, window_bounds = array<i64: 8, 4>}, {pipeline_mode = #tpu.pipeline_mode<synchronous>, transform_indices = @transform_1, window_bounds = array<i64: 8, 1>}, {transform_indices = @transform_2, window_bounds = array<i64: 4, 1024>}, {transform_indices = @transform_3, window_bounds = array<i64: 8, 1024>}]} {
    %c0 = arith.constant 0 : index
    %c0_0 = arith.constant 0 : index
    %0 = vector.load %arg1[%c0, %c0_0] : memref<8x4xf32, #tpu.memory_space<vmem>>, vector<8x4xf32>
    %c0_1 = arith.constant 0 : index
    %c0_2 = arith.constant 0 : index
    %1 = vector.load %arg3[%c0_1, %c0_2] : memref<4x1024xf32, #tpu.memory_space<vmem>>, vector<4x1024xf32>
    %cst = arith.constant dense<0.000000e+00> : vector<8x1024xf32>
    %2 = tpu.matmul %0, %1, %cst {dimension_numbers = #tpu.dot_dimension_numbers<[1], [0], [0], [1], [0, 0, 1, 1], [], []>} : vector<8x4xf32>, vector<4x1024xf32>, vector<8x1024xf32> -> vector<8x1024xf32>
    %c0_3 = arith.constant 0 : index
    %c0_4 = arith.constant 0 : index
    %3 = vector.load %arg2[%c0_3, %c0_4] : memref<8x1xf32, #tpu.memory_space<vmem>>, vector<8x1xf32>
    %4 = vector.broadcast %3 : vector<8x1xf32> to vector<8x1024xf32>
    %5 = arith.addf %2, %4 : vector<8x1024xf32>
    %cst_5 = arith.constant 0.000000e+00 : f32
    %6 = vector.broadcast %cst_5 : f32 to vector<8x1024xf32>
    %7 = arith.maximumf %5, %6 : vector<8x1024xf32>
    %c0_6 = arith.constant 0 : index
    %c0_7 = arith.constant 0 : index
    %8 = vector.load %arg4[%c0_6, %c0_7] : memref<8x1024xf32, #tpu.memory_space<vmem>>, vector<8x1024xf32>
    tpu.vector_store %arg4[%c0_6, %c0_7], %7 {strides = array<i32>} : memref<8x1024xf32, #tpu.memory_space<vmem>>, vector<8x1024xf32>,
    return
  }
  func.func @transform_0(%arg0: i32) -> (i32, i32) {
    %c0_i32 = arith.constant 0 : i32
    %c0_i32_0 = arith.constant 0 : i32
    %c0_i32_1 = arith.constant 0 : i32
    return %c0_i32, %c0_i32_0 : i32, i32
  }
  func.func @transform_1(%arg0: i32) -> (i32, i32) {
    %c0_i32 = arith.constant 0 : i32
    %c0_i32_0 = arith.constant 0 : i32
    %c0_i32_1 = arith.constant 0 : i32
    return %c0_i32, %c0_i32_0 : i32, i32
  }
  func.func @transform_2(%arg0: i32) -> (i32, i32) {
    %c0_i32 = arith.constant 0 : i32
    %c0_i32_0 = arith.constant 0 : i32
    return %c0_i32, %arg0 : i32, i32
  }
  func.func @transform_3(%arg0: i32) -> (i32, i32) {
    %c0_i32 = arith.constant 0 : i32
    %c0_i32_0 = arith.constant 0 : i32
    return %c0_i32, %arg0 : i32, i32
  }
}

</mosaic_0001>

<bundles_post_ra>
// kernel: tpu_custom_call.1
= control target key start
LH: loop header
LB: loop body
LE: loop exit
PB: predicated region body
PF: predicated region fallthrough
CT: control target
= control target key end

     0   :  { %8 = vsyncpa [#allocation3], 0  ;;  %s977_s0 = inlined_call_operand.vmem [shape: f32[8,4], index: 0, kind: input, shape index: {}]   ;;  %s978_s1 = inlined_call_operand.vmem [shape: f32[8,1], index: 1, kind: input, shape index: {}]   ;;  %s979_s2 = inlined_call_operand.hbm [shape: f32[4,4096], index: 2, kind: input, shape index: {}]   ;;  %s980_s3 = inlined_call_operand.hbm [shape: f32[8,4096], index: 3, kind: output, shape index: {}]  }
   0x1   :  { %10 = vsyncpa [#allocation3 + $0x1], 0 }
   0x2   :  { %11 = vsyncpa [#allocation4], 0 }
   0x3   :  { %13 = vsyncpa [#allocation4 + $0x1], 0  ;;  %s813_s12 = smov 0   ;;  %s815_s13 = smov 0  }
   0x4   :  { %s817_s14 = smov 0   ;;  %s819_s15 = smov 0  }
   0x5 LB: > { %s834_s16 = sadd.s32 4294967295, %s787_s15   ;;  %s614_s17 = sadd.s32 4294967294, %s787_s15   ;;  %s787_s15 = sphi %s819_s15, %s996_s15   ;;  %s783_s14 = sphi %s817_s14, %s995_s14   ;;  %s779_s13 = sphi %s815_s13, %s994_s13   ;;  %s775_s12 = sphi %s813_s12, %s993_s12  }
   0x6   : > { %s838_s18 = sadd.s32 1, %s787_s15   ;;  %s68_s19 = sadd.s32 1, %s783_s14 }
   0x7   : > { %s65_s20 = ssub.s32 %s787_s15, %s838_s18  ;;  %p75_p0 = scmp.ne.s32.totalorder %s783_s14, %s779_s13 }
   0x8   : > { %p66_p1 = scmp.eq.s32.totalorder %s65_s20, 0  ;;  %p76_p2 = scmp.eq.s32.totalorder %s787_s15, 0 }
   0x9   : > { %p81_p3 = scmp.ne.s32.totalorder %s779_s13, %s775_s12  ;;  %p82_p4 = scmp.eq.s32.totalorder %s834_s16, 0 }
   0xa   : > { %s850_s21 = scalar_select %p66_p1, %s783_s14, %s68_s19  }
   0xb   : > { %p852_p5 = por %p76_p2, %p75_p0  ;;  %p856_p6 = por %p82_p4, %p81_p3 }
   0xc   : > { %p105_p7 = scmp.eq.s32.totalorder %s834_s16, 3  ;;  %p111_p8 = scmp.eq.s32.totalorder %s614_s17, 3 }
   0xd   : > { %s984_s23 = scalar_select %p856_p6, 1, 0 }
   0xe   : > { %p654_p9 = scmp.lt.s32.totalorder %s787_s15, 4  ;;  %p862_p10 = por %p105_p7, %p75_p0 }
   0xf   : > { %p866_p11 = por %p111_p8, %p81_p3  ;;  %s137_s26 = sand.u32 1, %s783_s14  }
  0x10   : > { %s985_s24 = scalar_select %p862_p10, 1, 0 }
  0x11   : > { %s986_s25 = scalar_select %p866_p11, 1, 0 }
  0x12   : > { %s640_s27 = sshll.u32 %s787_s15, 9  ;;  %s617_s28 = sshll.u32 %s137_s26, 5 }
  0x13   : > { %s875_s4 = scalar_lea.hbm %s979_s2, %s640_s27  ;;  %s141_s5 = scalar_lea.vmem [#allocation2], %s617_s28 }
  0x14   : > { %s149_s6 = sshll.u32 %s141_s5, 4  ;;  %p879_p12 = pnand %p654_p9, %p852_p5  ;;  %s883_s6 = int_to_ptr.vmem [resolvable:$true] %s149_s6 }
  0x15   : > { %s138_s8 = scalar_lea.sflag [#allocation3], %s137_s26  ;;  %s695_s9 = scalar_lea.hbm %s875_s4, 512 }
  0x16   : > { %p696_p1 = scmp.ne.s32.totalorder %s875_s4, %s695_s9  ;;  %p697_p2 = pneg %p879_p12 }
  0x17   : > { %s700_s17 = scalar_lea.hbm %s979_s2, 2048  ;;  %p701_p5 = scmp.lt.s32.totalorder %s875_s4, %s979_s2 }
  0x18   : > { %p698_p3 = pnand %p697_p2, %p696_p1  ;;  %p702_p7 = scmp.lt.s32.totalorder %s700_s17, %s695_s9 }
  0x1a   : > { %p699_p4 = pneg %p698_p3  ;;  %p703_p8 = por %p702_p7, %p701_p5 }
  0x1c   : > { %p704_p9 = pnand %p703_p8, %p699_p4 }
  0x1e   : > { %707 = shalt.err (!%p704_p9)
}
  0x1f   : > { %s708_s22 = scalar_lea.vmem %s883_s6, 512  ;;  %s789_s26 = smov [#allocation2]  }
  0x20   : > { %p709_p13 = scmp.ne.s32.totalorder %s883_s6, %s708_s22  ;;  %s713_s27 = sshll.u32 %s789_s26, 4  ;;  %s714_s27 = int_to_ptr.vmem [resolvable:$false] %s713_s27 }
  0x21   : > { %s715_s28 = scalar_lea.vmem %s714_s27, 1024  ;;  %p716_p3 = scmp.lt.s32.totalorder %s883_s6, %s714_s27 }
  0x22   : > { %p711_p0 = pnand %p709_p13, %p697_p2  ;;  %p717_p11 = scmp.lt.s32.totalorder %s715_s28, %s708_s22 }
  0x24   : > { %p712_p1 = pneg %p711_p0  ;;  %p718_p10 = por %p717_p11, %p716_p3 }
  0x26   : > { %p719_p6 = pnand %p718_p10, %p712_p1 }
  0x28   : > { %722 = shalt.err (!%p719_p6)
}
  0x29   : > { %649 = dma.hbm_to_vmem [thread:$0]  (!%p879_p12), %s875_s4, 512, %s883_s6, %s138_s8  }
  0x2a   : > { %p988_p4 = scmp.lt.s32.totalorder %s787_s15, 5  ;;  %p989_p5 = scmp.ge.s32.totalorder %s787_s15, 1 }
  0x2c   : > { %p155_p13 = pnand %p989_p5, %p988_p4 }
  0x2d   : > { %s910_s29 = sand.u32 (!%p155_p13), 1, %s779_s13   ;;  %p990_p6 = scmp.ne.s32.totalorder (!%p155_p13), %s984_s23, 0 }
  0x2e   : > { %158 = sbr.rel (%p155_p13) target bundleno = 274 (0x112), region = 32  ;;  %s621_s30 = sshll.u32 (!%p155_p13), %s910_s29, 5 }
  0x2f   : > { %s161_s5 = scalar_lea.sflag (!%p155_p13), [#allocation3], %s910_s29  ;;  %s164_s9 = scalar_lea.vmem (!%p155_p13), [#allocation2], %s621_s30 }
  0x33   : > { %766 = dma.done.wait (%p990_p6), %s161_s5, 512  }
  0x34   : > { %768 = vsyncadd (%p990_p6), %s161_s5, 4294966784  ;;  %v790_v0 = vmov 0.0   ;;  %v791_v1 = vmov 0   ;;  %v190_v2 = vld [vmem:[%s164_s9] sm:$0xff]  ;;  %vm212_vm0 = vcmask 1043456   ;;  %v191_v3 = vld [vmem:[%s164_s9 + $0x8] sm:$0xff] }
  0x35   : > { %293 = vmatprep.mubr.f32.mxu0 %v790_v0  ;;  %364 = vmatprep.mubr.f32.mxu1 %v790_v0  ;;  %v204_v4 = vcombine.high %v190_v2, %v190_v2  ;;  %v205_v5 = vcombine.high %v191_v3, %v191_v3  ;;  %v192_v6 = vld [vmem:[%s164_s9 + $0x10] sm:$0xff]  ;;  %v193_v7 = vld [vmem:[%s164_s9 + $0x18] sm:$0xff]  ;;  %v194_v8 = vld [vmem:[%s978_s1] sm:$0xff]  ;;  %vm208_vm1 = vcmask 31744   ;;  %s622_s23 = sshll.u32 %s910_s29, 6  ;;  %s641_s11 = sshll.u32 %s834_s16, 10 }
  0x36   : > { %690 = vset.pattern.permute.xlu0 %v791_v1  ;;  %v189_v9 = vld [vmem:[%s977_s0] sm:$0xff]  ;;  %v206_v10 = vcombine.high %v192_v6, %v192_v6  ;;  %v207_v11 = vcombine.high %v193_v7, %v193_v7  ;;  %s186_s10 = scalar_lea.vmem [#allocation5], %s622_s23  ;;  %s941_s22 = scalar_lea.hbm %s980_s3, %s641_s11 }
  0x37   : > { %197 = vperm.xlu0 %690, %v194_v8   ;;  %623 = vmatprep.subr.msk.mxu0 %vm212_vm0, %v204_v4  ;;  %s544_s17 = sshll.u32 %s186_s10, 4  ;;  %s530_s16 = scalar_lea.sflag [#allocation4], %s910_s29  ;;  %s545_s17 = int_to_ptr.vmem [resolvable:$true] %s544_s17 }
  0x38   : > { %626 = vmatprep.subr.msk.mxu1 %vm212_vm0, %v205_v5  ;;  %624 = vmatpush1.msk.msra.mxu0 %vm212_vm0, %v190_v2  ;;  %s723_s26 = scalar_lea.vmem %s545_s17, 1024  ;;  %p991_p11 = scmp.ne.s32.totalorder %s985_s24, 0 }
  0x39   : > { %627 = vmatpush1.msk.msra.mxu1 %vm212_vm0, %v191_v3  ;;  %625 = vmatmul.mubr.msk.f32.vlgmr.msra.gmra.mxu0 %vm208_vm1, %v189_v9  ;;  %p724_p10 = scmp.ne.s32.totalorder %s545_s17, %s723_s26  ;;  %s792_s27 = smov [#allocation5]  }
  0x3a   : > { %628 = vmatmul.mubr.msk.f32.vlgmr.msra.gmra.mxu1 %vm208_vm1, %v189_v9  ;;  %629 = vmatprep.subr.msk.mxu0 %vm212_vm0, %v206_v10  ;;  %s727_s28 = sshll.u32 %s792_s27, 4  ;;  %s728_s28 = int_to_ptr.vmem [resolvable:$false] %s727_s28 }
  0x3b   : > { %632 = vmatprep.subr.msk.mxu1 %vm212_vm0, %v207_v11  ;;  %630 = vmatpush1.msk.msra.mxu0 %vm212_vm0, %v192_v6  ;;  %p725_p12 = pnand %p724_p10, %p991_p11  ;;  %s729_s30 = scalar_lea.vmem %s728_s28, 2048 }
  0x3c   : > { %633 = vmatpush1.msk.msra.mxu1 %vm212_vm0, %v193_v7  ;;  %435 = vmatprep.mubr.f32.mxu0 %v790_v0  ;;  %p730_p2 = scmp.lt.s32.totalorder %s545_s17, %s728_s28  ;;  %p731_p7 = scmp.lt.s32.totalorder %s729_s30, %s723_s26 }
  0x3d   : > { %506 = vmatprep.mubr.f32.mxu1 %v790_v0  ;;  %631 = vmatmul.mubr.msk.f32.vlgmr.msra.gmra.mxu0 %vm208_vm1, %v189_v9  ;;  %p726_p0 = pneg %p725_p12 }
  0x3e   : > { %634 = vmatmul.mubr.msk.f32.vlgmr.msra.gmra.mxu1 %vm208_vm1, %v189_v9  ;;  %p732_p8 = por %p731_p7, %p730_p2 }
  0x40   : > { %p733_p9 = pnand %p732_p8, %p726_p0 }
  0xb2   : > { %v198_v12 = vpop.permute.xlu0 %197 }
  0xf9   : > { %v295_v13 = vpop.f32.mrf.mxu0 }
  0xfa   : > { %v366_v14 = vpop.f32.mrf.mxu1  ;;  %v296_v15 = vadd.f32 %v295_v13, %v198_v12 }
  0xfb   : > { %v367_v16 = vadd.f32 %v366_v14, %v198_v12  ;;  %v297_v17 = vpop.f32.mrf.mxu0 }
  0xfc   : > { %v368_v18 = vpop.f32.mrf.mxu1  ;;  %v513_v19 = vmax.f32 %v296_v15, 0.0  ;;  %v298_v21 = vadd.f32 %v297_v17, %v198_v12 }
  0xfd   : > { %v515_v20 = vmax.f32 %v367_v16, 0.0  ;;  %v369_v22 = vadd.f32 %v368_v18, %v198_v12  ;;  %v437_v23 = vpop.f32.mrf.mxu0 }
  0xfe   : > { %v508_v24 = vpop.f32.mrf.mxu1  ;;  %521 = vst [vmem:[%s186_s10] sm:$0xff] %v513_v19  ;;  %v514_v25 = vmax.f32 %v298_v21, 0.0  ;;  %v438_v27 = vadd.f32 %v437_v23, %v198_v12 }
  0xff   : > { %523 = vst [vmem:[%s186_s10 + $0x10] sm:$0xff] %v515_v20  ;;  %v516_v26 = vmax.f32 %v369_v22, 0.0  ;;  %v509_v28 = vadd.f32 %v508_v24, %v198_v12  ;;  %v439_v29 = vpop.f32.mrf.mxu0 }
 0x100   : > { %v510_v30 = vpop.f32.mrf.mxu1  ;;  %522 = vst [vmem:[%s186_s10 + $0x8] sm:$0xff] %v514_v25  ;;  %v517_v31 = vmax.f32 %v438_v27, 0.0  ;;  %v440_v33 = vadd.f32 %v439_v29, %v198_v12 }
 0x101   : > { %524 = vst [vmem:[%s186_s10 + $0x18] sm:$0xff] %v516_v26  ;;  %v519_v32 = vmax.f32 %v509_v28, 0.0  ;;  %v511_v34 = vadd.f32 %v510_v30, %v198_v12 }
 0x102   : > { %525 = vst [vmem:[%s186_s10 + $0x20] sm:$0xff] %v517_v31  ;;  %v518_v35 = vmax.f32 %v440_v33, 0.0 }
 0x103   : > { %527 = vst [vmem:[%s186_s10 + $0x30] sm:$0xff] %v519_v32  ;;  %v520_v36 = vmax.f32 %v511_v34, 0.0 }
 0x104   : > { %526 = vst [vmem:[%s186_s10 + $0x28] sm:$0xff] %v518_v35 }
 0x105   : > { %528 = vst [vmem:[%s186_s10 + $0x38] sm:$0xff] %v520_v36 }
 0x106   : > { %736 = shalt.err (!%p733_p9)
}
 0x107   : > { %s737_s5 = scalar_lea.hbm %s941_s22, 1024  ;;  %s741_s4 = scalar_lea.hbm %s980_s3, 4096 }
 0x108   : > { %p738_p1 = scmp.ne.s32.totalorder %s941_s22, %s737_s5  ;;  %p742_p5 = scmp.lt.s32.totalorder %s941_s22, %s980_s3 }
 0x109   : > { %p743_p13 = scmp.lt.s32.totalorder %s741_s4, %s737_s5 }
 0x10a   : > { %p739_p3 = pnand %p738_p1, %p991_p11 }
 0x10b   : > { %p744_p6 = por %p743_p13, %p742_p5 }
 0x10c   : > { %p740_p4 = pneg %p739_p3 }
 0x10e   : > { %p745_p10 = pnand %p744_p6, %p740_p4 }
 0x110   : > { %748 = shalt.err (!%p745_p10)
}
 0x111   : > { %644 = dma.vmem_to_hbm [thread:$0]  (%p991_p11), %s545_s17, 1024, %s941_s22, %s530_s16  }
 0x112 PF: > { %p655_p12 = scmp.ge.s32.totalorder %s787_s15, 2  ;;  %s556_s8 = sand.u32 1, %s775_s12  }
 0x113   : > { %p992_p0 = scmp.ne.s32.totalorder %s986_s25, 0  ;;  %s557_s23 = scalar_lea.sflag [#allocation4], %s556_s8 }
 0x115   : > { %p651_p2 = pnand %p655_p12, %p992_p0 }
 0x117   : > { %p652_p7 = pneg %p651_p2 }
 0x119   : > { %770 = dma.done.wait (%p652_p7), %s557_s23, 1024  }
 0x11a   : > { %772 = vsyncadd (%p652_p7), %s557_s23, 4294966272  ;;  %p16_p8 = scmp.ge.s32.totalorder %s838_s18, 6   ;;  %s993_s12 = smov %s779_s13 }
 0x11b   : > { %s994_s13 = smov %s783_s14  ;;  %s995_s14 = smov %s850_s21 }
 0x11c   : > { %s996_s15 = smov %s838_s18  ;;  %18 = sbr.rel (!%p16_p8) target bundleno = 5 (0x5), region = 77 }
 0x121   :  { %562 = vsyncpa [#allocation3], 1 }
 0x122   :  { %564 = vsyncpa [#allocation3 + $0x1], 1 }
 0x123   :  { %565 = vsyncpa [#allocation4], 1 }
 0x124   :  { %567 = vsyncpa [#allocation4 + $0x1], 1 }

</bundles_post_ra>
